<compile_context>
chip_gen: v7x
topology: tpu7x:2x2x1
jax: 0.10.0
libtpu: 0.0.40
codegen_flags: <defaults>
</compile_context>

<pallas_src>
import functools

import jax
import jax.numpy as jnp
from jax.experimental import pallas as pl
from jax.experimental.pallas import tpu as pltpu


def _round_up(v, m):
    return (v + m - 1) // m * m


def _pick_tile(n):
    if n >= 256:
        return 256
    if n >= 128:
        return 128
    return _round_up(n, 8)


def _hard_mine_kernel(x_r_ref, x_c_ref, lbl_r_ref, lbl_c_ref,
                      ap_ref, an_ref, *, n_valid, tile_c):
    """One (row_block, col_block) step of hard positive/negative mining.

    x_r_ref:  (TR, D) f32   row block of features
    x_c_ref:  (TC, D) f32   column block of features
    lbl_r_ref:(TR, 1) int32 labels of the row block (column orientation)
    lbl_c_ref:(1, TC) int32 labels of the column block (row orientation)
    ap_ref:   (TR, 1) f32   running max over positives (squared dist; output)
    an_ref:   (TR, 1) f32   running min over negatives (squared dist; output)
    """
    c = pl.program_id(1)
    last_c = pl.num_programs(1) - 1

    # Init the resident per-row accumulators at the start of the column sweep.
    @pl.when(c == 0)
    def _init():
        ap_ref[...] = jnp.full(ap_ref.shape, -jnp.inf, dtype=ap_ref.dtype)
        an_ref[...] = jnp.full(an_ref.shape, jnp.inf, dtype=an_ref.dtype)

    x_r = x_r_ref[...]                                     # (TR, D)
    x_c = x_c_ref[...]                                     # (TC, D)

    # gram[i, j] = <x_r_i, x_c_j>; contracting dims (1, 1) feeds the MXU
    # directly (no explicit transpose, no (D, TC) copy).
    gram = jax.lax.dot_general(
        x_r, x_c, dimension_numbers=(((1,), (1,)), ((), ())),
        preferred_element_type=jnp.float32)                # (TR, TC)

    sq_r = jnp.sum(x_r * x_r, axis=1, keepdims=True)       # (TR, 1)
    # (1, TC) squared norms of the column block via a ones-row MXU contraction
    # (avoids an XLU transpose of a (TC, 1) vector into lane orientation).
    ones_row = jnp.ones((1, x_c.shape[1]), jnp.float32)
    sq_c = jax.lax.dot_general(
        ones_row, x_c * x_c, dimension_numbers=(((1,), (1,)), ((), ())),
        preferred_element_type=jnp.float32)                # (1, TC)

    dist2 = sq_r + sq_c - 2.0 * gram                       # (TR, TC)

    same = lbl_r_ref[...] == lbl_c_ref[...]                # (TR, TC) bool

    # Exclude padded columns (global column index >= n_valid).
    col_idx = c * tile_c + jax.lax.broadcasted_iota(jnp.int32, (1, tile_c), 1)
    valid = col_idx < n_valid                              # (1, TC)

    pos = jnp.logical_and(same, valid)
    neg = jnp.logical_and(jnp.logical_not(same), valid)

    inf = jnp.float32(jnp.inf)
    tile_ap = jnp.max(jnp.where(pos, dist2, -inf), axis=1, keepdims=True)
    tile_an = jnp.min(jnp.where(neg, dist2, inf), axis=1, keepdims=True)

    ap_ref[...] = jnp.maximum(ap_ref[...], tile_ap)
    an_ref[...] = jnp.minimum(an_ref[...], tile_an)

    # sqrt(clamp(.)) is monotone, so reducing squared distances and taking the
    # sqrt once per row equals elementwise sqrt-then-reduce (PyTorch module).
    @pl.when(c == last_c)
    def _finalize():
        ap_ref[...] = jnp.sqrt(jnp.maximum(ap_ref[...], 1e-12))
        an_ref[...] = jnp.sqrt(jnp.maximum(an_ref[...], 1e-12))


def triplet_loss(inputs, targets, margin=0.0):
    """inputs: (n, d) float32, targets: (n,) int -> (loss scalar, prec scalar)."""
    n, d = inputs.shape
    t = _pick_tile(n)
    n_pad = _round_up(n, t)
    d_pad = _round_up(d, 128)       # zero-padding d does not change distances

    x = jnp.zeros((n_pad, d_pad), jnp.float32)
    x = x.at[:n, :d].set(inputs.astype(jnp.float32))
    lbl = targets.astype(jnp.int32)
    lbl_col = jnp.zeros((n_pad, 1), jnp.int32).at[:n, 0].set(lbl)   # (n_pad, 1)
    lbl_row = jnp.zeros((1, n_pad), jnp.int32).at[0, :n].set(lbl)   # (1, n_pad)

    n_blocks = n_pad // t
    kernel = functools.partial(_hard_mine_kernel, n_valid=n, tile_c=t)

    dist_ap, dist_an = pl.pallas_call(
        kernel,
        out_shape=(
            jax.ShapeDtypeStruct((n_pad, 1), jnp.float32),
            jax.ShapeDtypeStruct((n_pad, 1), jnp.float32),
        ),
        grid_spec=pltpu.PrefetchScalarGridSpec(
            num_scalar_prefetch=0,
            grid=(n_blocks, n_blocks),
            in_specs=[
                pl.BlockSpec((t, d_pad), lambda r, c: (r, 0)),   # x row block
                pl.BlockSpec((t, d_pad), lambda r, c: (c, 0)),   # x col block
                pl.BlockSpec((t, 1), lambda r, c: (r, 0)),       # labels (col)
                pl.BlockSpec((1, t), lambda r, c: (0, c)),       # labels (row)
            ],
            out_specs=(
                pl.BlockSpec((t, 1), lambda r, c: (r, 0)),       # dist_ap
                pl.BlockSpec((t, 1), lambda r, c: (r, 0)),       # dist_an
            ),
        ),
        compiler_params=pltpu.CompilerParams(
            dimension_semantics=("parallel", "arbitrary")),
    )(x, x, lbl_col, lbl_row)

    ap = dist_ap[:n, 0]
    an = dist_an[:n, 0]
    # MarginRankingLoss(margin)(dist_an, dist_ap, y=1)
    #   = mean(max(0, -(dist_an - dist_ap) + margin))
    loss = jnp.mean(jnp.maximum(ap - an + margin, 0.0))
    prec = jnp.mean((an > ap).astype(jnp.float32))
    return loss, prec


def _reference(inputs, targets, margin=0.0):
    """Pure-JAX reference mirroring the PyTorch forward."""
    n = inputs.shape[0]
    sq = jnp.sum(inputs ** 2, axis=1, keepdims=True)
    dist = sq + sq.T - 2.0 * (inputs @ inputs.T)
    dist = jnp.sqrt(jnp.maximum(dist, 1e-12))
    mask = targets[:, None] == targets[None, :]
    dist_ap = jnp.max(jnp.where(mask, dist, -jnp.inf), axis=1)
    dist_an = jnp.min(jnp.where(mask, jnp.inf, dist), axis=1)
    loss = jnp.mean(jnp.maximum(dist_ap - dist_an + margin, 0.0))
    prec = jnp.sum(dist_an > dist_ap) / n
    return loss, prec


if __name__ == "__main__":
    key = jax.random.PRNGKey(0)
    n, d = 8, 32
    inputs = jax.random.normal(key, (n, d), dtype=jnp.float32)
    # 4 identities, 2 samples each: each row has >=1 positive and >=1 negative.
    targets = jnp.array([0, 0, 1, 1, 2, 2, 3, 3], dtype=jnp.int32)

    for margin in (0.0, 0.3):
        loss, prec = triplet_loss(inputs, targets, margin=margin)
        loss = jax.block_until_ready(loss)
        prec = jax.block_until_ready(prec)

        ref_loss, ref_prec = _reference(inputs, targets, margin=margin)
        assert jnp.allclose(loss, ref_loss, atol=1e-5, rtol=1e-5), (
            margin, loss, ref_loss)
        assert jnp.allclose(prec, ref_prec, atol=1e-6), (margin, prec, ref_prec)

    print("KERNEL_OK")
</pallas_src>

<mosaic_0001>
module attributes {stable_mosaic.version = 11 : i64} {
  func.func @_hard_mine_kernel(%arg0: i32, %arg1: i32, %arg2: memref<8x128xf32, #tpu.memory_space<vmem>>, %arg3: memref<8x128xf32, #tpu.memory_space<vmem>>, %arg4: memref<8x1xi32, #tpu.memory_space<vmem>>, %arg5: memref<1x8xi32, #tpu.memory_space<vmem>>, %arg6: memref<8x1xf32, #tpu.memory_space<vmem>>, %arg7: memref<8x1xf32, #tpu.memory_space<vmem>>) attributes {dimension_semantics = [#tpu.dimension_semantics<parallel>, #tpu.dimension_semantics<arbitrary>], iteration_bounds = array<i64: 1, 1>, scalar_prefetch = 0 : i64, scratch_operands = 0 : i64, tpu.core_type = #tpu.core_type<tc>, window_params = [{transform_indices = @transform_0, window_bounds = array<i64: 8, 128>}, {transform_indices = @transform_1, window_bounds = array<i64: 8, 128>}, {transform_indices = @transform_2, window_bounds = array<i64: 8, 1>}, {transform_indices = @transform_3, window_bounds = array<i64: 1, 8>}, {transform_indices = @transform_4, window_bounds = array<i64: 8, 1>}, {transform_indices = @transform_5, window_bounds = array<i64: 8, 1>}]} {
    %c0_i32 = arith.constant 0 : i32
    %0 = arith.cmpi eq, %arg1, %c0_i32 : i32
    %1 = arith.extui %0 : i1 to i32
    %c0_i32_0 = arith.constant 0 : i32
    %2 = arith.cmpi ne, %1, %c0_i32_0 : i32
    scf.if %2 {
      %cst_29 = arith.constant 0xFF800000 : f32
      %52 = vector.broadcast %cst_29 : f32 to vector<8x1xf32>
      %c0_30 = arith.constant 0 : index
      %c0_31 = arith.constant 0 : index
      %53 = vector.load %arg6[%c0_30, %c0_31] : memref<8x1xf32, #tpu.memory_space<vmem>>, vector<8x1xf32>
      tpu.vector_store %arg6[%c0_30, %c0_31], %52 {strides = array<i32>} : memref<8x1xf32, #tpu.memory_space<vmem>>, vector<8x1xf32>,
      %cst_32 = arith.constant 0x7F800000 : f32
      %54 = vector.broadcast %cst_32 : f32 to vector<8x1xf32>
      %c0_33 = arith.constant 0 : index
      %c0_34 = arith.constant 0 : index
      %55 = vector.load %arg7[%c0_33, %c0_34] : memref<8x1xf32, #tpu.memory_space<vmem>>, vector<8x1xf32>
      tpu.vector_store %arg7[%c0_33, %c0_34], %54 {strides = array<i32>} : memref<8x1xf32, #tpu.memory_space<vmem>>, vector<8x1xf32>,
    } else {
    }
    %c0 = arith.constant 0 : index
    %c0_1 = arith.constant 0 : index
    %3 = vector.load %arg2[%c0, %c0_1] : memref<8x128xf32, #tpu.memory_space<vmem>>, vector<8x128xf32>
    %c0_2 = arith.constant 0 : index
    %c0_3 = arith.constant 0 : index
    %4 = vector.load %arg3[%c0_2, %c0_3] : memref<8x128xf32, #tpu.memory_space<vmem>>, vector<8x128xf32>
    %cst = arith.constant dense<0.000000e+00> : vector<8x8xf32>
    %5 = tpu.matmul %3, %4, %cst {dimension_numbers = #tpu.dot_dimension_numbers<[1], [1], [0], [0], [0, 0, 1, 0], [], []>} : vector<8x128xf32>, vector<8x128xf32>, vector<8x8xf32> -> vector<8x8xf32>
    %6 = arith.mulf %3, %3 : vector<8x128xf32>
    %cst_4 = arith.constant dense<0.000000e+00> : vector<8xf32>
    %7 = vector.multi_reduction <add>, %6, %cst_4 [1] : vector<8x128xf32> to vector<8xf32>
    %8 = vector.shape_cast %7 : vector<8xf32> to vector<8x1xf32>
    %cst_5 = arith.constant 1.000000e+00 : f32
    %9 = vector.broadcast %cst_5 : f32 to vector<1x128xf32>
    %10 = arith.mulf %4, %4 : vector<8x128xf32>
    %cst_6 = arith.constant dense<0.000000e+00> : vector<1x8xf32>
    %11 = tpu.matmul %9, %10, %cst_6 {dimension_numbers = #tpu.dot_dimension_numbers<[1], [1], [0], [0], [0, 0, 1, 0], [], []>} : vector<1x128xf32>, vector<8x128xf32>, vector<1x8xf32> -> vector<1x8xf32>
    %12 = vector.broadcast %8 : vector<8x1xf32> to vector<8x8xf32>
    %13 = vector.broadcast %11 : vector<1x8xf32> to vector<8x8xf32>
    %14 = arith.addf %12, %13 : vector<8x8xf32>
    %cst_7 = arith.constant 2.000000e+00 : f32
    %15 = vector.broadcast %cst_7 : f32 to vector<8x8xf32>
    %16 = arith.mulf %15, %5 : vector<8x8xf32>
    %17 = arith.subf %14, %16 : vector<8x8xf32>
    %c0_8 = arith.constant 0 : index
    %c0_9 = arith.constant 0 : index
    %18 = vector.load %arg4[%c0_8, %c0_9] : memref<8x1xi32, #tpu.memory_space<vmem>>, vector<8x1xi32>
    %c0_10 = arith.constant 0 : index
    %c0_11 = arith.constant 0 : index
    %19 = vector.load %arg5[%c0_10, %c0_11] : memref<1x8xi32, #tpu.memory_space<vmem>>, vector<1x8xi32>
    %20 = vector.broadcast %18 : vector<8x1xi32> to vector<8x8xi32>
    %21 = vector.broadcast %19 : vector<1x8xi32> to vector<8x8xi32>
    %22 = arith.cmpi eq, %20, %21 : vector<8x8xi32>
    %c8_i32 = arith.constant 8 : i32
    %23 = arith.muli %arg1, %c8_i32 : i32
    %24 = tpu.iota {dimensions = array<i32: 1>} : vector<1x8xi32>
    %25 = vector.broadcast %23 : i32 to vector<1x8xi32>
    %26 = arith.addi %25, %24 : vector<1x8xi32>
    %c8_i32_12 = arith.constant 8 : i32
    %27 = vector.broadcast %c8_i32_12 : i32 to vector<1x8xi32>
    %28 = arith.cmpi slt, %26, %27 : vector<1x8xi32>
    %29 = vector.broadcast %28 : vector<1x8xi1> to vector<8x8xi1>
    %30 = arith.andi %22, %29 : vector<8x8xi1>
    %cst_13 = arith.constant dense<true> : vector<8x8xi1>
    %31 = arith.xori %22, %cst_13 : vector<8x8xi1>
    %32 = vector.broadcast %28 : vector<1x8xi1> to vector<8x8xi1>
    %33 = arith.andi %31, %32 : vector<8x8xi1>
    %cst_14 = arith.constant 0.000000e+00 : f32
    %cst_15 = arith.constant 0x7F800000 : f32
    %34 = arith.subf %cst_14, %cst_15 : f32
    %35 = vector.broadcast %34 : f32 to vector<8x8xf32>
    %36 = arith.select %30, %17, %35 : vector<8x8xi1>, vector<8x8xf32>
    %cst_16 = arith.constant dense<0xFF800000> : vector<8xf32>
    %37 = vector.multi_reduction <maximumf>, %36, %cst_16 [1] : vector<8x8xf32> to vector<8xf32>
    %38 = vector.shape_cast %37 : vector<8xf32> to vector<8x1xf32>
    %cst_17 = arith.constant 0x7F800000 : f32
    %39 = vector.broadcast %cst_17 : f32 to vector<8x8xf32>
    %40 = arith.select %33, %17, %39 : vector<8x8xi1>, vector<8x8xf32>
    %cst_18 = arith.constant dense<0x7F800000> : vector<8xf32>
    %41 = vector.multi_reduction <minimumf>, %40, %cst_18 [1] : vector<8x8xf32> to vector<8xf32>
    %42 = vector.shape_cast %41 : vector<8xf32> to vector<8x1xf32>
    %c0_19 = arith.constant 0 : index
    %c0_20 = arith.constant 0 : index
    %43 = vector.load %arg6[%c0_19, %c0_20] : memref<8x1xf32, #tpu.memory_space<vmem>>, vector<8x1xf32>
    %44 = arith.maximumf %43, %38 : vector<8x1xf32>
    %c0_21 = arith.constant 0 : index
    %c0_22 = arith.constant 0 : index
    %45 = vector.load %arg6[%c0_21, %c0_22] : memref<8x1xf32, #tpu.memory_space<vmem>>, vector<8x1xf32>
    tpu.vector_store %arg6[%c0_21, %c0_22], %44 {strides = array<i32>} : memref<8x1xf32, #tpu.memory_space<vmem>>, vector<8x1xf32>,
    %c0_23 = arith.constant 0 : index
    %c0_24 = arith.constant 0 : index
    %46 = vector.load %arg7[%c0_23, %c0_24] : memref<8x1xf32, #tpu.memory_space<vmem>>, vector<8x1xf32>
    %47 = arith.minimumf %46, %42 : vector<8x1xf32>
    %c0_25 = arith.constant 0 : index
    %c0_26 = arith.constant 0 : index
    %48 = vector.load %arg7[%c0_25, %c0_26] : memref<8x1xf32, #tpu.memory_space<vmem>>, vector<8x1xf32>
    tpu.vector_store %arg7[%c0_25, %c0_26], %47 {strides = array<i32>} : memref<8x1xf32, #tpu.memory_space<vmem>>, vector<8x1xf32>,
    %c0_i32_27 = arith.constant 0 : i32
    %49 = arith.cmpi eq, %arg1, %c0_i32_27 : i32
    %50 = arith.extui %49 : i1 to i32
    %c0_i32_28 = arith.constant 0 : i32
    %51 = arith.cmpi ne, %50, %c0_i32_28 : i32
    scf.if %51 {
      %c0_29 = arith.constant 0 : index
      %c0_30 = arith.constant 0 : index
      %52 = vector.load %arg6[%c0_29, %c0_30] : memref<8x1xf32, #tpu.memory_space<vmem>>, vector<8x1xf32>
      %cst_31 = arith.constant 9.99999996E-13 : f32
      %53 = vector.broadcast %cst_31 : f32 to vector<8x1xf32>
      %54 = arith.maximumf %52, %53 : vector<8x1xf32>
      %55 = math.sqrt %54 : vector<8x1xf32>
      %c0_32 = arith.constant 0 : index
      %c0_33 = arith.constant 0 : index
      %56 = vector.load %arg6[%c0_32, %c0_33] : memref<8x1xf32, #tpu.memory_space<vmem>>, vector<8x1xf32>
      tpu.vector_store %arg6[%c0_32, %c0_33], %55 {strides = array<i32>} : memref<8x1xf32, #tpu.memory_space<vmem>>, vector<8x1xf32>,
      %c0_34 = arith.constant 0 : index
      %c0_35 = arith.constant 0 : index
      %57 = vector.load %arg7[%c0_34, %c0_35] : memref<8x1xf32, #tpu.memory_space<vmem>>, vector<8x1xf32>
      %cst_36 = arith.constant 9.99999996E-13 : f32
      %58 = vector.broadcast %cst_36 : f32 to vector<8x1xf32>
      %59 = arith.maximumf %57, %58 : vector<8x1xf32>
      %60 = math.sqrt %59 : vector<8x1xf32>
      %c0_37 = arith.constant 0 : index
      %c0_38 = arith.constant 0 : index
      %61 = vector.load %arg7[%c0_37, %c0_38] : memref<8x1xf32, #tpu.memory_space<vmem>>, vector<8x1xf32>
      tpu.vector_store %arg7[%c0_37, %c0_38], %60 {strides = array<i32>} : memref<8x1xf32, #tpu.memory_space<vmem>>, vector<8x1xf32>,
    } else {
    }
    return
  }
  func.func @transform_0(%arg0: i32, %arg1: i32) -> (i32, i32) {
    %c0_i32 = arith.constant 0 : i32
    %c0_i32_0 = arith.constant 0 : i32
    return %arg0, %c0_i32 : i32, i32
  }
  func.func @transform_1(%arg0: i32, %arg1: i32) -> (i32, i32) {
    %c0_i32 = arith.constant 0 : i32
    %c0_i32_0 = arith.constant 0 : i32
    return %arg1, %c0_i32 : i32, i32
  }
  func.func @transform_2(%arg0: i32, %arg1: i32) -> (i32, i32) {
    %c0_i32 = arith.constant 0 : i32
    %c0_i32_0 = arith.constant 0 : i32
    return %arg0, %c0_i32 : i32, i32
  }
  func.func @transform_3(%arg0: i32, %arg1: i32) -> (i32, i32) {
    %c0_i32 = arith.constant 0 : i32
    %c0_i32_0 = arith.constant 0 : i32
    return %c0_i32, %arg1 : i32, i32
  }
  func.func @transform_4(%arg0: i32, %arg1: i32) -> (i32, i32) {
    %c0_i32 = arith.constant 0 : i32
    %c0_i32_0 = arith.constant 0 : i32
    return %arg0, %c0_i32 : i32, i32
  }
  func.func @transform_5(%arg0: i32, %arg1: i32) -> (i32, i32) {
    %c0_i32 = arith.constant 0 : i32
    %c0_i32_0 = arith.constant 0 : i32
    return %arg0, %c0_i32 : i32, i32
  }
}

</mosaic_0001>

<bundles_post_ra>
// kernel: tpu_custom_call.1
= control target key start
LH: loop header
LB: loop body
LE: loop exit
PB: predicated region body
PF: predicated region fallthrough
CT: control target
= control target key end

     0   :  { %11 = vsyncpa [#allocation3], 0  ;;  %s312_s18 = smov [#allocation2]   ;;  %s407_s0 = inlined_call_operand.vmem [shape: f32[8,128], index: 0, kind: input, shape index: {}]   ;;  %s408_s1 = inlined_call_operand.hbm [shape: f32[8,128], index: 1, kind: input, shape index: {}]   ;;  %s409_s2 = inlined_call_operand.vmem [shape: s32[8,1], index: 2, kind: input, shape index: {}]   ;;  %s410_s3 = inlined_call_operand.vmem [shape: s32[1,8], index: 3, kind: input, shape index: {}]   ;;  %s411_s4 = inlined_call_operand.vmem [shape: f32[8,1], index: 4, kind: output, shape index: {0}]   ;;  %s412_s5 = inlined_call_operand.vmem [shape: f32[8,1], index: 5, kind: output, shape index: {1}]  }
   0x1   :  { %s20_s19 = sshll.u32 %s312_s18, 4  ;;  %s288_s22 = scalar_lea.hbm %s408_s1, 128  ;;  %s21_s19 = int_to_ptr.vmem [resolvable:$true] %s20_s19 }
   0x2   :  { %p289_p0 = scmp.ne.s32.totalorder %s408_s1, %s288_s22  ;;  %p292_p1 = scmp.lt.u32.totalorder %s288_s22, %s408_s1 }
   0x4   :  { %p294_p2 = pnand %p292_p1, %p289_p0 }
   0x6   :  { %297 = shalt.err (!%p294_p2)
}
   0x7   :  { %s298_s27 = scalar_lea.vmem %s21_s19, 128  ;;  %p303_p4 = scmp.lt.s32.totalorder %s21_s19, %s21_s19 }
   0x8   :  { %p299_p3 = scmp.ne.s32.totalorder %s21_s19, %s298_s27  ;;  %p304_p5 = scmp.lt.s32.totalorder %s298_s27, %s298_s27 }
   0xa   :  { %p305_p6 = por %p304_p5, %p303_p4 }
   0xc   :  { %p306_p7 = pnand %p305_p6, %p299_p3 }
   0xe   :  { %309 = shalt.err (!%p306_p7)
}
   0xf   :  { %23 = dma.hbm_to_vmem [thread:$0]  %s408_s1, 128, %s21_s19, [#allocation3]  }
  0x10   :  { %310 = dma.done.wait [#allocation3], 128  }
  0x11   :  { %311 = vsyncadd [#allocation3], 4294967168  ;;  %v313_v0 = vmov 0.0   ;;  %vm314_vm0 = vmmov 0   ;;  %v315_v1 = vmov 0   ;;  %v39_v2 = vld [vmem:[#allocation2] sm:$0xff]  ;;  %v184_v9 = vlaneseq }
  0x12   :  { %270 = vmatprep.subr.mxu1 %v313_v0  ;;  %265 = vmatprep.subr.mxu0 %v313_v0  ;;  %v38_v3 = vld [vmem:[%s407_s0] sm:$0xff]  ;;  %v113_v4 = vmul.f32 %v39_v2, %v39_v2  ;;  %v316_v6 = vmov 1.0   ;;  %vm35_vm1 = vcmask 7168   ;;  %v317_v8 = vmov -inf  }
  0x13   :  { %272 = vmatprep.mubr.msk.f32.mxu1 %vm314_vm0, %v313_v0  ;;  %267 = vmatprep.mubr.msk.f32.mxu0 %vm314_vm0, %v313_v0  ;;  %v110_v5 = vmul.f32 %v38_v3, %v38_v3  ;;  %v191_v7 = vld [vmem:[%s409_s2] sm:$0xff]  ;;  %36 = vst.msk [vmem:[%s411_s4] sm:$0xff] %vm35_vm1, %v317_v8  ;;  %v185_v11 = vshrl.u32 %v184_v9, 7  ;;  %v203_v14 = vand.u32 127, %v184_v9  ;;  %vm318_vm4 = vmmov 1  }
  0x14   :  { %283 = vset.pattern.permute.xlu0 %v315_v1  ;;  %266 = vmatpush3.xpose.msra.mxu0 %v39_v2  ;;  %v260_v13 = vld [vmem:[%s410_s3] ss:$0 sm:$0xff]  ;;  %vm213_vm7 = vcmask 64512   ;;  %v319_v28 = vmov inf  }
  0x15   :  { %271 = vmatpush3.xpose.msra.mxu1 %v113_v4  ;;  %111 = vadd.xlane.f32.xlu0 %v110_v5  ;;  %v186_v12 = vsub.s32 0, %v185_v11  ;;  %vm206_vm3 = vcmp.lt.s32.totalorder %v203_v14, 8  ;;  %37 = vst.msk [vmem:[%s412_s5] sm:$0xff] %vm35_vm1, %v319_v28 }
  0x17   :  { %268 = vmatmul.mubr.f32.vlgmr.msra.gmra.mrb[0].mxu0 %v38_v3 }
  0x18   :  { %273 = vmatmul.mubr.f32.vlgmr.msra.gmra.mrb[0].mxu1 %v316_v6 }
  0x1a   :  { %v221_v29 = vld [vmem:[%s411_s4] sm:$0xff] }
  0x1c   :  { %v225_v32 = vld [vmem:[%s412_s5] sm:$0xff] }
  0x2b   :  { %194 = vperm.xlu0 %283, %v191_v7  }
  0xa2   :  { %v112_v10 = vpop.xlane.xlu0 %111 }
  0xaa   :  { %v195_v15 = vpop.permute.xlu0 %194 }
  0xab   :  { %vm200_vm2 = vcmp.eq.s32.totalorder %v195_v15, %v260_v13 }
  0xac   :  { %vm210_vm5 = vmxor %vm200_vm2, %vm318_vm4 }
  0xad   :  { %vm209_vm6 = vmand %vm200_vm2, %vm206_vm3 }
  0xae   :  { %vm211_vm8 = vmand %vm210_vm5, %vm206_vm3 }
  0xea   :  { %v106_v16 = vpop.f32.mrb[0].mxu0 }
  0xeb   :  { %v269_v17 = vpop.f32.mrb[1].mxu0  ;;  %v180_v18 = vpop.f32.mrb[0].mxu1  ;;  %v189_v20 = vmul.f32 2.0, %v106_v16 }
  0xec   :  { %v187_v19 = vrot.slane %v180_v18, %v186_v12  ;;  %v274_v21 = vpop.f32.mrb[1].mxu1 }
  0xee   :  { %v188_v22 = vadd.f32 %v187_v19, %v112_v10 }
  0xf0   :  { %v190_v23 = vsub.f32 %v188_v22, %v189_v20 }
  0xf2   :  { %v212_v24 = vsel %vm209_vm6, %v190_v23, -inf  ;;  %v217_v26 = vsel %vm211_vm8, %v190_v23, inf }
  0xf3   :  { %v214_v25 = vsel %vm213_vm7, %v212_v24, -inf  ;;  %v218_v27 = vsel %vm213_vm7, %v217_v26, inf }
  0xf4   :  { %215 = vmax.xlane.f32.xlu1 %v214_v25 }
  0xf8   :  { %219 = vmin.xlane.f32.xlu1 %v218_v27 }
 0x181   :  { %v216_v30 = vpop.xlane.xlu1 %215 }
 0x182   :  { %v222_v31 = vmax.f32 %v221_v29, %v216_v30 }
 0x184   :  { %224 = vst.msk [vmem:[%s411_s4] sm:$0xff] %vm35_vm1, %v222_v31 }
 0x185   :  { %v220_v33 = vpop.xlane.xlu1 %219 }
 0x186   :  { %v226_v34 = vmin.f32 %v225_v32, %v220_v33 }
 0x188   :  { %227 = vst.msk [vmem:[%s412_s5] sm:$0xff] %vm35_vm1, %v226_v34 }
 0x18b   :  { %v231_v35 = vld [vmem:[%s411_s4] sm:$0xff] }
 0x18c   :  { %v232_v36 = vmax.f32 %v231_v35, 1e-12 }
 0x18e   :  { %284 = vrsqrt.f32 %v232_v36  ;;  %vm235_vm9 = vcmp.eq.f32.partialorder %v232_v36, inf  ;;  %v238_v41 = vand.u32 2147483648, %v232_v36  ;;  %vm237_vm10 = vcmp.eq.f32.partialorder %v232_v36, 0.0 }
 0x18f   :  { %v241_v37 = vld [vmem:[%s412_s5] sm:$0xff] }
 0x190   :  { %v242_v38 = vmax.f32 %v241_v37, 1e-12 }
 0x192   :  { %286 = vrsqrt.f32 %v242_v38  ;;  %vm245_vm11 = vcmp.eq.f32.partialorder %v242_v38, inf  ;;  %v248_v46 = vand.u32 2147483648, %v242_v38  ;;  %vm247_vm12 = vcmp.eq.f32.partialorder %v242_v38, 0.0 }
 0x198   :  { %v285_v39 = vpop.eup %284 }
 0x199   :  { %v234_v40 = vmul.f32 %v285_v39, %v232_v36 }
 0x19b   :  { %v236_v42 = vsel %vm235_vm9, %v232_v36, %v234_v40 }
 0x19c   :  { %v287_v43 = vpop.eup %286  ;;  %v239_v44 = vsel %vm237_vm10, %v238_v41, %v236_v42 }
 0x19d   :  { %240 = vst.msk [vmem:[%s411_s4] sm:$0xff] %vm35_vm1, %v239_v44  ;;  %v244_v45 = vmul.f32 %v287_v43, %v242_v38 }
 0x19f   :  { %v246_v47 = vsel %vm245_vm11, %v242_v38, %v244_v45 }
 0x1a0   :  { %v249_v48 = vsel %vm247_vm12, %v248_v46, %v246_v47 }
 0x1a1   :  { %250 = vst.msk [vmem:[%s412_s5] sm:$0xff] %vm35_vm1, %v249_v48 }
 0x1a2   :  { %259 = vsyncpa [#allocation3], 1 }

</bundles_post_ra>
